<compile_context>
chip_gen: v7x
topology: tpu7x:2x2x1
jax: 0.10.0
libtpu: 0.0.40
codegen_flags: <defaults>
</compile_context>

<pallas_src>
import functools

import jax
import jax.numpy as jnp
from jax.experimental import pallas as pl
from jax.experimental.pallas import tpu as pltpu


def _rope_cache_kernel(inv_ref, c0_ref, s0_ref, cos_ref, sin_ref, *,
                       rows_per_step, duplicate):
    """Compute one (tile_rows, L) tile of the rotary cos/sin cache.

    inv_ref  : (1, lc)        f32 per-lane inverse frequency (resident).
    c0_ref   : (tile_rows, lc) f32 cos(A0), A0 = (r*ppr + off[l])*inv[l]
    s0_ref   : (tile_rows, lc) f32 sin(A0)          (both grid-invariant).
    cos/sin  : (tile_rows, L) outputs; L == lc, or L == 2*lc when `duplicate`.

    Per-step angle: ang = A0 + base*inv, base = program_id(0)*rows_per_step.
    Angle-addition identity:
        cos(ang) = C0*cos(b) - S0*sin(b);  sin(ang) = S0*cos(b) + C0*sin(b)
    so the only trig per step is on a single (1, lc) row.
    """
    lc = inv_ref.shape[-1]
    # NOTE: exact in f32 only for positions < 2**24 (same limit as v1).
    base = (pl.program_id(0) * rows_per_step).astype(jnp.float32)
    shift = base * inv_ref[...]                     # (1, lc)
    cb = jnp.cos(shift)
    sb = jnp.sin(shift)

    c0 = c0_ref[...]
    s0 = s0_ref[...]
    c = (c0 * cb - s0 * sb).astype(cos_ref.dtype)
    s = (s0 * cb + c0 * sb).astype(sin_ref.dtype)

    if duplicate:
        # emb = cat(freqs, freqs): write each half with a slice store instead
        # of materializing a (tile_rows, 2*lc) concatenated temporary.
        cos_ref[:, :lc] = c
        cos_ref[:, lc:] = c
        sin_ref[:, :lc] = s
        sin_ref[:, lc:] = s
    else:
        cos_ref[...] = c
        sin_ref[...] = s


class LlamaRotaryEmbedding:
    """JAX/Pallas port of the PyTorch LlamaRotaryEmbedding module."""

    def __init__(self, dim, max_position_embeddings=2048, base=10000,
                 dtype=jnp.float32, max_tile_rows=512):
        self.dim = dim
        self.base = base
        self.dtype = jnp.dtype(dtype)            # default serving dtype
        self.max_tile_rows = max_tile_rows
        self.max_seq_len_cached = max_position_embeddings
        # inv_freq = 1 / base ** (arange(0, dim, 2) / dim)   (shape: dim//2)
        self.inv_freq = 1.0 / (
            base ** (jnp.arange(0, dim, 2, dtype=jnp.float32) / dim))
        # one (cos, sin) cache per serving dtype, built lazily; avoids the
        # per-call full-slab astype() HBM round-trip.
        self._caches = {}
        self._caches[self.dtype] = self._build_cache(
            self.max_seq_len_cached, self.dtype)

    # ------------------------------------------------------------------ #
    @staticmethod
    def _pick_tile_rows(rows_total, out_l, out_itemsize, max_tile_rows):
        # ~1 MiB per output tile: 2 outputs x 2 pipeline buffers + the two
        # resident f32 C0/S0 inputs stay well under v7x's 64 MiB VMEM (and the
        # 32 MiB scoped default); also generous on v5e/v6e's 128 MiB.
        budget_rows = max(16, (1 << 20) // max(1, out_l * out_itemsize))
        tile = min(rows_total, max_tile_rows, budget_rows, 512)
        # Give the grid >= ~4 steps when there is enough work: restores
        # compute/writeback pipelining and lets a megacore split the axis.
        if rows_total >= 64:
            tile = min(tile, pl.cdiv(rows_total, 4))
        if tile < rows_total:
            tile = max(16, tile - tile % 16)   # 16-multiple: bf16-safe stores
        return max(1, tile)

    # ------------------------------------------------------------------ #
    def _build_cache(self, seq_len, dtype):
        dim = self.dim
        dtype = jnp.dtype(dtype)
        inv_freq = self.inv_freq                             # (dim//2,)
        inv_full = jnp.concatenate([inv_freq, inv_freq])     # (dim,)

        if dim >= 256 and (dim // 2) % 128 == 0:
            # Half-frequency mode: trig on dim//2 lanes, duplicate both halves.
            duplicate = True
            pos_per_row = 1
            lc, out_l = dim // 2, dim
            inv_lane = inv_freq
            pos_off = jnp.zeros((lc,), jnp.float32)
            rows_total = seq_len
        elif dim < 128 and 128 % dim == 0:
            # Packed lane-dense mode: P = 128//dim positions per 128-lane row.
            duplicate = False
            pos_per_row = 128 // dim
            lc = out_l = 128
            inv_lane = jnp.tile(inv_full, pos_per_row)                    # (128,)
            pos_off = (jnp.arange(128, dtype=jnp.int32) // dim).astype(
                jnp.float32)                                              # (128,)
            rows_total = -(-seq_len // pos_per_row)                       # cdiv
        else:
            # Standard (seq, dim) slab (dim >= 128, or not packable).
            duplicate = False
            pos_per_row = 1
            lc = out_l = dim
            inv_lane = inv_full
            pos_off = jnp.zeros((lc,), jnp.float32)
            rows_total = seq_len

        tile_rows = self._pick_tile_rows(rows_total, out_l, dtype.itemsize,
                                         self.max_tile_rows)
        rows_per_step = tile_rows * pos_per_row
        grid = (pl.cdiv(rows_total, tile_rows),)

        # One-time, grid-invariant setup (tiny: tile_rows x lc elements):
        #   A0[r,l] = (r*ppr + off[l]) * inv[l];  C0 = cos(A0), S0 = sin(A0).
        # Passed as inputs with a constant index_map -> stays resident in VMEM
        # across all grid steps (and per-core under megacore splitting).
        inv_lane = inv_lane.astype(jnp.float32)
        r = jnp.arange(tile_rows, dtype=jnp.float32) * float(pos_per_row)
        a0 = (r[:, None] + pos_off[None, :]) * inv_lane[None, :]
        c0 = jnp.cos(a0)
        s0 = jnp.sin(a0)
        inv_row = inv_lane.reshape(1, lc)

        kernel = functools.partial(_rope_cache_kernel,
                                   rows_per_step=rows_per_step,
                                   duplicate=duplicate)

        # TODO(synk): once writeback-bound, a pipeline_mode=pl.Buffered(3)
        # sweep on the out_specs is a cheap extra few % on v6e.
        cos2d, sin2d = pl.pallas_call(
            kernel,
            out_shape=(
                jax.ShapeDtypeStruct((rows_total, out_l), dtype),
                jax.ShapeDtypeStruct((rows_total, out_l), dtype),
            ),
            grid=grid,
            in_specs=[
                pl.BlockSpec((1, lc), lambda i: (0, 0)),          # inv (resident)
                pl.BlockSpec((tile_rows, lc), lambda i: (0, 0)),  # C0 (resident)
                pl.BlockSpec((tile_rows, lc), lambda i: (0, 0)),  # S0 (resident)
            ],
            out_specs=(
                pl.BlockSpec((tile_rows, out_l), lambda i: (i, 0)),
                pl.BlockSpec((tile_rows, out_l), lambda i: (i, 0)),
            ),
            compiler_params=pltpu.CompilerParams(
                dimension_semantics=("parallel",),
                vmem_limit_bytes=32 * 1024 * 1024),
        )(inv_row, c0, s0)

        if pos_per_row > 1:
            # Un-pack the lane-dense layout back to (seq, dim); pure reshape
            # (row-major order is identical), plus a slice for padded rows.
            cos2d = cos2d.reshape(rows_total * pos_per_row, dim)[:seq_len]
            sin2d = sin2d.reshape(rows_total * pos_per_row, dim)[:seq_len]

        # match PyTorch buffers: [None, None, :, :]
        cos = cos2d.reshape(1, 1, seq_len, dim)
        sin = sin2d.reshape(1, 1, seq_len, dim)
        return cos, sin

    # ------------------------------------------------------------------ #
    def __call__(self, x, seq_len=None):
        if seq_len is None:
            seq_len = x.shape[-2]
        serve_dtype = jnp.dtype(x.dtype)
        if seq_len > self.max_seq_len_cached:
            # TODO(synk): growth path mutates Python state and recompiles the
            # pallas_call for each new (longer) seq_len — same recompute-on-
            # growth semantics as the PyTorch module, but not jit/trace safe.
            self.max_seq_len_cached = seq_len
            self._caches = {serve_dtype: self._build_cache(seq_len, serve_dtype)}
        elif serve_dtype not in self._caches:
            # Memoize a cache built directly in the serving dtype instead of
            # astype()-ing the whole slab through HBM on every call.
            self._caches[serve_dtype] = self._build_cache(
                self.max_seq_len_cached, serve_dtype)
        cos, sin = self._caches[serve_dtype]
        return cos[:, :, :seq_len, :], sin[:, :, :seq_len, :]


def _reference(dim, seq_len, base=10000, dtype=jnp.float32):
    inv_freq = 1.0 / (base ** (jnp.arange(0, dim, 2, dtype=jnp.float32) / dim))
    t = jnp.arange(seq_len, dtype=jnp.float32)
    freqs = jnp.einsum("i,j->ij", t, inv_freq)
    emb = jnp.concatenate([freqs, freqs], axis=-1)
    return (jnp.cos(emb)[None, None].astype(dtype),
            jnp.sin(emb)[None, None].astype(dtype))


if __name__ == "__main__":
    # Angle-addition factorization drifts from the direct outer-product
    # reference by a couple of f32 ulps of the angle -> use atol=5e-5.
    ATOL = 5e-5

    key = jax.random.PRNGKey(0)
    # small shapes consistent with the module: batch=2, heads=4, seq=8, dim=32
    batch, heads, seq, dim = 2, 4, 8, 32
    x = jax.random.normal(key, (batch, heads, seq, dim), dtype=jnp.float32)

    rope = LlamaRotaryEmbedding(dim, max_position_embeddings=64)
    cos, sin = rope(x, seq_len=seq)
    jax.block_until_ready((cos, sin))
    assert cos.shape == (1, 1, seq, dim), cos.shape
    assert sin.shape == (1, 1, seq, dim), sin.shape
    assert cos.dtype == x.dtype and sin.dtype == x.dtype
    ref_cos, ref_sin = _reference(dim, seq)
    assert jnp.allclose(cos, ref_cos, atol=ATOL), "cos mismatch (packed path)"
    assert jnp.allclose(sin, ref_sin, atol=ATOL), "sin mismatch (packed path)"

    # seq_len=None path (falls back to x's sequence axis)
    cos_n, sin_n = rope(x)
    assert jnp.allclose(cos_n, ref_cos, atol=ATOL), "cos mismatch (seq_len=None)"

    # recompute path: seq_len > max_seq_len_cached
    long_seq = 128
    cos2, sin2 = rope(x, seq_len=long_seq)
    jax.block_until_ready(cos2)
    ref_cos2, ref_sin2 = _reference(dim, long_seq)
    assert cos2.shape == (1, 1, long_seq, dim)
    assert jnp.allclose(cos2, ref_cos2, atol=ATOL), "cos mismatch (recache)"
    assert jnp.allclose(sin2, ref_sin2, atol=ATOL), "sin mismatch (recache)"

    # standard lane-dense path (dim == 128) and half-frequency path (dim >= 256)
    for d in (128, 256):
        s = 16
        xd = jax.random.normal(key, (1, 1, s, d), dtype=jnp.float32)
        rp = LlamaRotaryEmbedding(d, max_position_embeddings=s)
        cd, sd = rp(xd, seq_len=s)
        jax.block_until_ready(cd)
        rc, rs = _reference(d, s)
        assert jnp.allclose(cd, rc, atol=ATOL), f"cos mismatch dim={d}"
        assert jnp.allclose(sd, rs, atol=ATOL), f"sin mismatch dim={d}"

    # multi-tile pipelined path (grid > 1 with a partial last block)
    d, s = 128, 120
    xt = jax.random.normal(key, (1, 1, s, d), dtype=jnp.float32)
    rp = LlamaRotaryEmbedding(d, max_position_embeddings=s, max_tile_rows=16)
    ct, st = rp(xt, seq_len=s)
    jax.block_until_ready(ct)
    rc, rs = _reference(d, s)
    assert ct.shape == (1, 1, s, d)
    assert jnp.allclose(ct, rc, atol=ATOL), "cos mismatch (tiled)"
    assert jnp.allclose(st, rs, atol=ATOL), "sin mismatch (tiled)"

    # deeper default grid (seq=2048, dim=128): tile capped at 512 -> grid >= 4
    d, s = 128, 2048
    xg = jnp.zeros((1, 1, s, d), dtype=jnp.float32)
    rg = LlamaRotaryEmbedding(d, max_position_embeddings=s)
    cg, sg = rg(xg, seq_len=s)
    jax.block_until_ready(cg)
    rcg, rsg = _reference(d, s)
    # angles reach ~2047 here; allow proportional angle-rounding slack
    assert jnp.allclose(cg, rcg, atol=5e-4), "cos mismatch (deep grid)"
    assert jnp.allclose(sg, rsg, atol=5e-4), "sin mismatch (deep grid)"

    # serving-dtype (bf16) cache built directly by the kernel store
    rb = LlamaRotaryEmbedding(32, max_position_embeddings=16, dtype=jnp.bfloat16)
    xb = jnp.zeros((1, 1, 16, 32), dtype=jnp.bfloat16)
    cb, sb = rb(xb, seq_len=16)
    jax.block_until_ready(cb)
    rcb, rsb = _reference(32, 16, dtype=jnp.bfloat16)
    assert cb.dtype == jnp.bfloat16 and sb.dtype == jnp.bfloat16
    assert jnp.allclose(cb.astype(jnp.float32), rcb.astype(jnp.float32),
                        atol=1e-2), "cos mismatch (bf16)"
    assert jnp.allclose(sb.astype(jnp.float32), rsb.astype(jnp.float32),
                        atol=1e-2), "sin mismatch (bf16)"

    # serving-dtype memoization path: f32-built rope called with bf16 x builds
    # (once) and returns a bf16 cache — no per-call astype of the whole slab.
    cm, sm = rope(x.astype(jnp.bfloat16), seq_len=seq)
    jax.block_until_ready(cm)
    assert cm.dtype == jnp.bfloat16 and sm.dtype == jnp.bfloat16
    assert jnp.allclose(cm.astype(jnp.float32),
                        ref_cos.astype(jnp.float32), atol=1e-2), \
        "cos mismatch (memoized bf16 serving dtype)"

    print("KERNEL_OK")
</pallas_src>

<mosaic_0001>
module attributes {stable_mosaic.version = 11 : i64} {
  func.func @_rope_cache_kernel(%arg0: i32, %arg1: memref<1x128xf32, #tpu.memory_space<vmem>>, %arg2: memref<16x128xf32, #tpu.memory_space<vmem>>, %arg3: memref<16x128xf32, #tpu.memory_space<vmem>>, %arg4: memref<16x128xf32, #tpu.memory_space<vmem>>, %arg5: memref<16x128xf32, #tpu.memory_space<vmem>>) attributes {dimension_semantics = [#tpu.dimension_semantics<parallel>], iteration_bounds = array<i64: 1>, scalar_prefetch = 0 : i64, scratch_operands = 0 : i64, tpu.core_type = #tpu.core_type<tc>, window_params = [{pipeline_mode = #tpu.pipeline_mode<synchronous>, transform_indices = @transform_0, window_bounds = array<i64: 1, 128>}, {pipeline_mode = #tpu.pipeline_mode<synchronous>, transform_indices = @transform_1, window_bounds = array<i64: 16, 128>}, {pipeline_mode = #tpu.pipeline_mode<synchronous>, transform_indices = @transform_2, window_bounds = array<i64: 16, 128>}, {transform_indices = @transform_3, window_bounds = array<i64: 16, 128>}, {transform_indices = @transform_4, window_bounds = array<i64: 16, 128>}]} {
    %c64_i32 = arith.constant 64 : i32
    %0 = arith.muli %arg0, %c64_i32 : i32
    %1 = arith.sitofp %0 : i32 to f32
    %c0 = arith.constant 0 : index
    %c0_0 = arith.constant 0 : index
    %2 = vector.load %arg1[%c0, %c0_0] : memref<1x128xf32, #tpu.memory_space<vmem>>, vector<1x128xf32>
    %3 = vector.broadcast %1 : f32 to vector<1x128xf32>
    %4 = arith.mulf %3, %2 : vector<1x128xf32>
    %5 = math.cos %4 : vector<1x128xf32>
    %6 = math.sin %4 : vector<1x128xf32>
    %c0_1 = arith.constant 0 : index
    %c0_2 = arith.constant 0 : index
    %7 = vector.load %arg2[%c0_1, %c0_2] : memref<16x128xf32, #tpu.memory_space<vmem>>, vector<16x128xf32>
    %c0_3 = arith.constant 0 : index
    %c0_4 = arith.constant 0 : index
    %8 = vector.load %arg3[%c0_3, %c0_4] : memref<16x128xf32, #tpu.memory_space<vmem>>, vector<16x128xf32>
    %9 = vector.broadcast %5 : vector<1x128xf32> to vector<16x128xf32>
    %10 = arith.mulf %7, %9 : vector<16x128xf32>
    %11 = vector.broadcast %6 : vector<1x128xf32> to vector<16x128xf32>
    %12 = arith.mulf %8, %11 : vector<16x128xf32>
    %13 = arith.subf %10, %12 : vector<16x128xf32>
    %14 = vector.broadcast %5 : vector<1x128xf32> to vector<16x128xf32>
    %15 = arith.mulf %8, %14 : vector<16x128xf32>
    %16 = vector.broadcast %6 : vector<1x128xf32> to vector<16x128xf32>
    %17 = arith.mulf %7, %16 : vector<16x128xf32>
    %18 = arith.addf %15, %17 : vector<16x128xf32>
    %c0_5 = arith.constant 0 : index
    %c0_6 = arith.constant 0 : index
    %19 = vector.load %arg4[%c0_5, %c0_6] : memref<16x128xf32, #tpu.memory_space<vmem>>, vector<16x128xf32>
    tpu.vector_store %arg4[%c0_5, %c0_6], %13 {strides = array<i32>} : memref<16x128xf32, #tpu.memory_space<vmem>>, vector<16x128xf32>,
    %c0_7 = arith.constant 0 : index
    %c0_8 = arith.constant 0 : index
    %20 = vector.load %arg5[%c0_7, %c0_8] : memref<16x128xf32, #tpu.memory_space<vmem>>, vector<16x128xf32>
    tpu.vector_store %arg5[%c0_7, %c0_8], %18 {strides = array<i32>} : memref<16x128xf32, #tpu.memory_space<vmem>>, vector<16x128xf32>,
    return
  }
  func.func @transform_0(%arg0: i32) -> (i32, i32) {
    %c0_i32 = arith.constant 0 : i32
    %c0_i32_0 = arith.constant 0 : i32
    %c0_i32_1 = arith.constant 0 : i32
    return %c0_i32, %c0_i32_0 : i32, i32
  }
  func.func @transform_1(%arg0: i32) -> (i32, i32) {
    %c0_i32 = arith.constant 0 : i32
    %c0_i32_0 = arith.constant 0 : i32
    %c0_i32_1 = arith.constant 0 : i32
    return %c0_i32, %c0_i32_0 : i32, i32
  }
  func.func @transform_2(%arg0: i32) -> (i32, i32) {
    %c0_i32 = arith.constant 0 : i32
    %c0_i32_0 = arith.constant 0 : i32
    %c0_i32_1 = arith.constant 0 : i32
    return %c0_i32, %c0_i32_0 : i32, i32
  }
  func.func @transform_3(%arg0: i32) -> (i32, i32) {
    %c0_i32 = arith.constant 0 : i32
    %c0_i32_0 = arith.constant 0 : i32
    return %arg0, %c0_i32 : i32, i32
  }
  func.func @transform_4(%arg0: i32) -> (i32, i32) {
    %c0_i32 = arith.constant 0 : i32
    %c0_i32_0 = arith.constant 0 : i32
    return %arg0, %c0_i32 : i32, i32
  }
}

</mosaic_0001>

<bundles_post_ra>
// kernel: tpu_custom_call.1
= control target key start
LH: loop header
LB: loop body
LE: loop exit
PB: predicated region body
PF: predicated region fallthrough
CT: control target
= control target key end

     0   :  { %10 = vsyncpa [#allocation3], 0  ;;  %s620_s0 = inlined_call_operand.hbm [shape: f32[1,128], index: 0, kind: input, shape index: {}]   ;;  %s621_s1 = inlined_call_operand.hbm [shape: f32[16,128], index: 1, kind: input, shape index: {}]   ;;  %s622_s2 = inlined_call_operand.hbm [shape: f32[16,128], index: 2, kind: input, shape index: {}]   ;;  %s623_s3 = inlined_call_operand.hbm [shape: f32[16,128], index: 3, kind: output, shape index: {0}]   ;;  %s624_s4 = inlined_call_operand.hbm [shape: f32[16,128], index: 4, kind: output, shape index: {1}]  }
   0x1   :  { %11 = vsyncpa [#allocation6], 0 }
   0x2   :  { %12 = vsyncpa [#allocation4], 0 }
   0x3   :  { %13 = vsyncpa [#allocation10], 0  ;;  %s482_s15 = smov [#allocation5]   ;;  %s364_s19 = scalar_lea.hbm %s621_s1, 256 }
   0x4   :  { %s29_s16 = sshll.u32 %s482_s15, 4  ;;  %p365_p0 = scmp.ne.s32.totalorder %s621_s1, %s364_s19  ;;  %s30_s16 = int_to_ptr.vmem [resolvable:$true] %s29_s16 }
   0x5   :  { %p368_p1 = scmp.lt.u32.totalorder %s364_s19, %s621_s1 }
   0x7   :  { %p370_p2 = pnand %p368_p1, %p365_p0 }
   0x9   :  { %373 = shalt.err (!%p370_p2)
}
   0xa   :  { %s374_s24 = scalar_lea.vmem %s30_s16, 256  ;;  %p379_p4 = scmp.lt.s32.totalorder %s30_s16, %s30_s16 }
   0xb   :  { %p375_p3 = scmp.ne.s32.totalorder %s30_s16, %s374_s24  ;;  %p380_p5 = scmp.lt.s32.totalorder %s374_s24, %s374_s24 }
   0xd   :  { %p381_p6 = por %p380_p5, %p379_p4 }
   0xf   :  { %p382_p7 = pnand %p381_p6, %p375_p3 }
  0x11   :  { %385 = shalt.err (!%p382_p7)
}
  0x12   :  { %s483_s25 = smov 128   ;;  %s484_s26 = smov 8  }
  0x13   :  { %35 = dma.hbm_to_vmem [thread:$0]  %s621_s1, 256, %s30_s16, [#allocation6], %s483_s25, %s483_s25, %s484_s26  }
  0x14   :  { %s485_s29 = smov [#allocation2]   ;;  %s486_s5 = smov [#allocation7]  }
  0x15   :  { %s20_s30 = sshll.u32 %s485_s29, 4  ;;  %s41_s6 = sshll.u32 %s486_s5, 4  ;;  %s21_s30 = int_to_ptr.vmem [resolvable:$true] %s20_s30  ;;  %s42_s6 = int_to_ptr.vmem [resolvable:$true] %s41_s6 }
  0x16   :  { %s386_s9 = scalar_lea.hbm %s620_s0, 16 }
  0x17   :  { %p387_p8 = scmp.ne.s32.totalorder %s620_s0, %s386_s9  ;;  %p390_p9 = scmp.lt.u32.totalorder %s386_s9, %s620_s0 }
  0x19   :  { %p392_p10 = pnand %p390_p9, %p387_p8 }
  0x1b   :  { %395 = shalt.err (!%p392_p10)
}
  0x1c   :  { %s396_s1 = scalar_lea.vmem %s21_s30, 16  ;;  %s400_s14 = scalar_lea.vmem %s21_s30, 32 }
  0x1d   :  { %p397_p11 = scmp.ne.s32.totalorder %s21_s30, %s396_s1  ;;  %p401_p12 = scmp.lt.s32.totalorder %s21_s30, %s21_s30 }
  0x1e   :  { %p402_p13 = scmp.lt.s32.totalorder %s400_s14, %s396_s1 }
  0x20   :  { %p403_p0 = por %p402_p13, %p401_p12 }
  0x22   :  { %p404_p1 = pnand %p403_p0, %p397_p11 }
  0x24   :  { %407 = shalt.err (!%p404_p1)
}
  0x25   :  { %23 = dma.hbm_to_vmem [thread:$0]  %s620_s0, 16, %s21_s30, [#allocation3]  }
  0x26   :  { %s408_s19 = scalar_lea.hbm %s622_s2, 256 }
  0x27   :  { %p409_p2 = scmp.ne.s32.totalorder %s622_s2, %s408_s19  ;;  %p412_p3 = scmp.lt.u32.totalorder %s408_s19, %s622_s2 }
  0x29   :  { %p414_p4 = pnand %p412_p3, %p409_p2 }
  0x2b   :  { %417 = shalt.err (!%p414_p4)
}
  0x2c   :  { %s418_s24 = scalar_lea.vmem %s42_s6, 256  ;;  %p423_p6 = scmp.lt.s32.totalorder %s42_s6, %s42_s6 }
  0x2d   :  { %p419_p5 = scmp.ne.s32.totalorder %s42_s6, %s418_s24  ;;  %p424_p7 = scmp.lt.s32.totalorder %s418_s24, %s418_s24 }
  0x2f   :  { %p425_p8 = por %p424_p7, %p423_p6 }
  0x31   :  { %p426_p9 = pnand %p425_p8, %p419_p5 }
  0x33   :  { %429 = shalt.err (!%p426_p9)
}
  0x34   :  { %47 = dma.hbm_to_vmem [thread:$0]  %s622_s2, 256, %s42_s6, [#allocation6], %s483_s25, %s483_s25, %s484_s26  }
  0x35   :  { %474 = dma.done.wait [#allocation3], 16  }
  0x36   :  { %475 = vsyncadd [#allocation3], 4294967280 }
  0x37   :  { %476 = dma.done.wait [#allocation6], 512  }
  0x38   :  { %477 = vsyncadd [#allocation6], 4294966784  ;;  %v59_v0 = vld [vmem:[#allocation2] sm:$0x1]  ;;  %v487_v13 = vmov 683565275  }
  0x39   :  { %v562_v1 = vmul.f32 0.0, %v59_v0  ;;  %v488_v15 = vmov 2475754826   ;;  %v489_v17 = vmov 2131351028   ;;  %s493_s2 = smov [#allocation8]  }
  0x3a   :  { %v490_v19 = vmov 2102212464   ;;  %v491_v21 = vmov 920167782   ;;  %v492_v28 = vmov 1326507024  }
  0x3b   :  { %v65_v2 = vand.u32 2139095040, %v562_v1  ;;  %v62_v4 = vand.u32 2147483647, %v562_v1  ;;  %vm64_vm7 = vcmp.lt.s32.totalorder %v562_v1, 0  ;;  %vm154_vm15 = vweird.f32 %v562_v1  ;;  %s306_s28 = sshll.u32 %s493_s2, 4  ;;  %s494_s29 = smov [#allocation9]   ;;  %s307_s28 = int_to_ptr.vmem [resolvable:$true] %s306_s28 }
  0x3c   :  { %s318_s30 = sshll.u32 %s494_s29, 4  ;;  %s430_s5 = scalar_lea.vmem %s307_s28, 256  ;;  %s583_s30 = int_to_ptr.vmem [resolvable:$true] %s318_s30 }
  0x3d   :  { %v66_v3 = vshrl.u32 %v65_v2, 23  ;;  %v69_v7 = vand.u32 8388607, %v62_v4  ;;  %vm63_vm8 = vcmp.le.f32.partialorder %v62_v4, 0.7853982  ;;  %p431_p10 = scmp.ne.s32.totalorder %s307_s28, %s430_s5  ;;  %p435_p11 = scmp.lt.s32.totalorder %s307_s28, %s307_s28 }
  0x3e   :  { %p436_p12 = scmp.lt.s32.totalorder %s430_s5, %s430_s5 }
  0x3f   :  { %v335_v5 = vadd.s32 4294967169, %v66_v3  ;;  %v70_v10 = vor.u32 8388608, %v69_v7 }
  0x40   :  { %p437_p13 = por %p436_p12, %p435_p11 }
  0x41   :  { %v72_v6 = vadd.s32 1, %v335_v5  ;;  %v110_v30 = vshll.u32 %v70_v10, 8 }
  0x42   :  { %p438_p0 = pnand %p437_p13, %p431_p10 }
  0x43   :  { %vm73_vm0 = vcmp.gt.s32.totalorder %v72_v6, 0 }
  0x44   :  { %v74_v8 = vsel %vm73_vm0, %v72_v6, 0 }
  0x45   :  { %v76_v9 = vand.u32 31, %v74_v8  ;;  %v75_v11 = vshrl.u32 %v74_v8, 5 }
  0x47   :  { %v77_v12 = vsub.s32 32, %v76_v9  ;;  %v79_v14 = vshll.u32 %v487_v13, %v76_v9  ;;  %v82_v16 = vshll.u32 %v488_v15, %v76_v9  ;;  %v85_v18 = vshll.u32 %v489_v17, %v76_v9 }
  0x48   :  { %v88_v20 = vshll.u32 %v490_v19, %v76_v9  ;;  %v91_v22 = vshll.u32 %v491_v21, %v76_v9  ;;  %vm94_vm1 = vcmp.lt.s32.totalorder %v75_v11, 1  ;;  %vm97_vm2 = vcmp.lt.s32.totalorder %v75_v11, 4 }
  0x49   :  { %v78_v23 = vshrl.u32 %v487_v13, %v77_v12  ;;  %v80_v24 = vshrl.u32 %v488_v15, %v77_v12  ;;  %v83_v25 = vshrl.u32 %v489_v17, %v77_v12  ;;  %v86_v26 = vshrl.u32 %v490_v19, %v77_v12 }
  0x4a   :  { %v89_v27 = vshrl.u32 %v491_v21, %v77_v12  ;;  %v92_v29 = vshrl.u32 %v492_v28, %v77_v12  ;;  %vm95_vm3 = vcmp.lt.s32.totalorder %v75_v11, 2  ;;  %vm96_vm4 = vcmp.lt.s32.totalorder %v75_v11, 3 }
  0x4b   :  { %v81_v31 = vor.u32 %v80_v24, %v79_v14  ;;  %v84_v32 = vor.u32 %v83_v25, %v82_v16  ;;  %v87_v33 = vor.u32 %v86_v26, %v85_v18 }
  0x4c   :  { %v90_v34 = vor.u32 %v89_v27, %v88_v20  ;;  %v93_v35 = vor.u32 %v92_v29, %v91_v22  ;;  %v274_v22 = vlaneseq }
  0x4d   :  { %v98_v36 = vsel %vm94_vm1, %v78_v23, %v81_v31  ;;  %v99_v37 = vsel %vm97_vm2, %v87_v33, 2102212464  ;;  %v102_v38 = vsel %vm94_vm1, %v81_v31, %v84_v32  ;;  %v106_v39 = vsel %vm94_vm1, %v84_v32, %v87_v33 }
  0x4e   :  { %v100_v40 = vsel %vm96_vm4, %v84_v32, %v99_v37  ;;  %v103_v41 = vsel %vm97_vm2, %v90_v34, 920167782  ;;  %v107_v42 = vsel %vm97_vm2, %v93_v35, 1326507024  ;;  %v275_v25 = vshrl.u32 %v274_v22, 7 }
  0x4f   :  { %v104_v43 = vsel %vm96_vm4, %v87_v33, %v103_v41  ;;  %v108_v44 = vsel %vm96_vm4, %v90_v34, %v107_v42  ;;  %v101_v45 = vsel %vm95_vm3, %v98_v36, %v100_v40  ;;  %v269_v36 = vld [vmem:[#allocation5] sm:$0xff]  ;;  %v270_v40 = vld [vmem:[#allocation5 + $0x8] sm:$0xff]  ;;  %v272_v41 = vld [vmem:[#allocation7 + $0x8] sm:$0xff] }
  0x50   :  { %v105_v46 = vsel %vm95_vm3, %v102_v38, %v104_v43  ;;  %v109_v47 = vsel %vm95_vm3, %v106_v39, %v108_v44  ;;  %v117_v52 = vmul.u32 %v110_v30, %v101_v45  ;;  %v276_v31 = vsub.s32 0, %v275_v25  ;;  %v271_v39 = vld [vmem:[#allocation7] sm:$0xff] }
  0x51   :  { %v568_v48 = vmul.u32.u64.low %v110_v30, %v109_v47  ;;  %v569_v49 = vmul.u32.u64.high %v110_v30, %v109_v47, %v568_v48  ;;  %v571_v50 = vmul.u32.u64.low %v110_v30, %v105_v46  ;;  %v572_v51 = vmul.u32.u64.high %v110_v30, %v105_v46, %v571_v50 }
  0x53   :  { %vm119_vm5 = vc.u32 %v569_v49, %v571_v50  ;;  %v120_v53 = vadd.s32 1, %v572_v51  ;;  %v118_v0 = vadd.s32 %v571_v50, %v569_v49 }
  0x55   :  { %v121_v54 = vsel %vm119_vm5, %v120_v53, %v572_v51 }
  0x56   :  { %v122_v55 = vadd.s32 %v121_v54, %v117_v52 }
  0x58   :  { %v123_v56 = vadd.s32 536870912, %v122_v55 }
  0x5a   :  { %v124_v57 = vshrl.u32 %v123_v56, 30 }
  0x5c   :  { %v125_v58 = vshll.u32 %v124_v57, 30  ;;  %v148_v14 = vsub.s32 4, %v124_v57 }
  0x5e   :  { %v126_v59 = vsub.s32 %v122_v55, %v125_v58  ;;  %v149_v17 = vsel %vm64_vm7, %v148_v14, %v124_v57 }
  0x5f   :  { %v151_v20 = vsel %vm63_vm8, 0, %v149_v17 }
  0x60   :  { %v128_v60 = vsub.s32 0, %v126_v59  ;;  %v258_v21 = vadd.s32 3, %v151_v20  ;;  %v155_v23 = vand.u32 3, %v151_v20 }
  0x62   :  { %v336_v61 = vmin.u32 %v128_v60, %v126_v59  ;;  %v259_v24 = vand.u32 3, %v258_v21  ;;  %vm160_vm9 = vcmp.eq.s32.totalorder %v155_v23, 2  ;;  %vm157_vm11 = vcmp.eq.s32.totalorder %v155_v23, 0 }
  0x63   :  { %vm156_vm13 = vcmp.lt.s32.totalorder %v155_v23, 2 }
  0x64   :  { %v130_v62 = vclz %v336_v61  ;;  %vm264_vm10 = vcmp.eq.s32.totalorder %v259_v24, 2  ;;  %vm261_vm12 = vcmp.eq.s32.totalorder %v259_v24, 0  ;;  %vm260_vm14 = vcmp.lt.s32.totalorder %v259_v24, 2 }
  0x66   :  { %v337_v63 = vadd.s32 4294967294, %v130_v62 }
  0x68   :  { %vm338_vm6 = vcmp.lt.s32.totalorder %v337_v63, 0 }
  0x69   :  { %v133_v2 = vsel %vm338_vm6, 0, %v337_v63 }
  0x6a   :  { %v134_v3 = vsub.s32 32, %v133_v2  ;;  %v135_v5 = vshll.u32 %v126_v59, %v133_v2  ;;  %v138_v6 = vsub.s32 4294967266, %v133_v2 }
  0x6c   :  { %v136_v7 = vshrl.u32 %v118_v0, %v134_v3  ;;  %v139_v8 = vadd.s32 127, %v138_v6 }
  0x6e   :  { %v137_v9 = vor.u32 %v136_v7, %v135_v5  ;;  %v140_v10 = vshll.u32 %v139_v8, 23 }
  0x70   :  { %v141_v11 = vor.u32 4788187, %v140_v10  ;;  %v144_v12 = vcvt.s32.f32 %v137_v9 }
  0x72   :  { %v142_v13 = vand.u32 2147483647, %v141_v11 }
  0x74   :  { %v145_v15 = vmul.f32 %v144_v12, %v142_v13 }
  0x76   :  { %v146_v16 = vxor.u32 2147483648, %v145_v15 }
  0x78   :  { %v147_v18 = vsel %vm64_vm7, %v146_v16, %v145_v15 }
  0x79   :  { %v150_v19 = vsel %vm63_vm8, %v562_v1, %v147_v18 }
  0x7a   :  { %360 = vcosq.f32 %v150_v19 }
  0x7b   :  { %362 = vsinq.f32 %v150_v19 }
  0x84   :  { %v361_v26 = vpop.eup %360 }
  0x85   :  { %v363_v27 = vpop.eup %362  ;;  %v161_v28 = vxor.u32 2147483648, %v361_v26 }
  0x86   :  { %v158_v4 = vxor.u32 2147483648, %v363_v27 }
  0x87   :  { %v162_v29 = vsel %vm160_vm9, %v161_v28, %v363_v27  ;;  %v266_v30 = vsel %vm264_vm10, %v161_v28, %v363_v27 }
  0x88   :  { %v159_v32 = vsel %vm157_vm11, %v361_v26, %v158_v4  ;;  %v263_v33 = vsel %vm261_vm12, %v361_v26, %v158_v4 }
  0x89   :  { %v163_v34 = vsel %vm156_vm13, %v159_v32, %v162_v29  ;;  %v267_v35 = vsel %vm260_vm14, %v263_v33, %v266_v30 }
  0x8a   :  { %v164_v37 = vsel %vm154_vm15, nan, %v163_v34  ;;  %v268_v38 = vsel %vm154_vm15, nan, %v267_v35 }
  0x8b   :  { %v277_v42 = vrot.slane %v164_v37, %v276_v31  ;;  %v285_v43 = vrot.slane %v268_v38, %v276_v31 }
  0x8d   :  { %v279_v44 = vmul.f32 %v277_v42, %v269_v36  ;;  %v287_v45 = vmul.f32 %v285_v43, %v271_v39  ;;  %v280_v1 = vmul.f32 %v277_v42, %v270_v40  ;;  %v288_v46 = vmul.f32 %v285_v43, %v272_v41 }
  0x8e   :  { %v291_v47 = vmul.f32 %v277_v42, %v271_v39  ;;  %v293_v48 = vmul.f32 %v285_v43, %v269_v36  ;;  %v292_v49 = vmul.f32 %v277_v42, %v272_v41  ;;  %v294_v50 = vmul.f32 %v285_v43, %v270_v40 }
  0x8f   :  { %v289_v51 = vsub.f32 %v279_v44, %v287_v45  ;;  %v290_v52 = vsub.f32 %v280_v1, %v288_v46 }
  0x90   :  { %v295_v53 = vadd.f32 %v293_v48, %v291_v47  ;;  %v296_v54 = vadd.f32 %v294_v50, %v292_v49 }
  0x91   :  { %297 = vst [vmem:[#allocation8] sm:$0xff] %v289_v51  ;;  %298 = vst [vmem:[#allocation8 + $0x8] sm:$0xff] %v290_v52 }
  0x92   :  { %299 = vst [vmem:[#allocation9] sm:$0xff] %v295_v53  ;;  %300 = vst [vmem:[#allocation9 + $0x8] sm:$0xff] %v296_v54 }
  0x93   :  { %441 = shalt.err (!%p438_p0)
}
  0x94   :  { %s442_s8 = scalar_lea.hbm %s623_s3, 256 }
  0x95   :  { %p443_p1 = scmp.ne.s32.totalorder %s623_s3, %s442_s8  ;;  %p446_p2 = scmp.lt.u32.totalorder %s442_s8, %s623_s3 }
  0x97   :  { %p448_p3 = pnand %p446_p2, %p443_p1 }
  0x99   :  { %451 = shalt.err (!%p448_p3)
}
  0x9a   :  { %312 = dma.vmem_to_hbm [thread:$0]  %s307_s28, 256, %s623_s3, [#allocation4], %s483_s25, %s483_s25, %s484_s26  }
  0x9b   :  { %s452_s14 = scalar_lea.vmem %s583_s30, 256  ;;  %p457_p5 = scmp.lt.s32.totalorder %s583_s30, %s583_s30 }
  0x9c   :  { %p453_p4 = scmp.ne.s32.totalorder %s583_s30, %s452_s14  ;;  %p458_p6 = scmp.lt.s32.totalorder %s452_s14, %s452_s14 }
  0x9e   :  { %p459_p7 = por %p458_p6, %p457_p5 }
  0xa0   :  { %p460_p8 = pnand %p459_p7, %p453_p4 }
  0xa2   :  { %463 = shalt.err (!%p460_p8)
}
  0xa3   :  { %s464_s17 = scalar_lea.hbm %s624_s4, 256 }
  0xa4   :  { %p465_p9 = scmp.ne.s32.totalorder %s624_s4, %s464_s17  ;;  %p468_p10 = scmp.lt.u32.totalorder %s464_s17, %s624_s4 }
  0xa6   :  { %p470_p11 = pnand %p468_p10, %p465_p9 }
  0xa8   :  { %473 = shalt.err (!%p470_p11)
}
  0xa9   :  { %324 = dma.vmem_to_hbm [thread:$0]  %s583_s30, 256, %s624_s4, [#allocation10], %s483_s25, %s483_s25, %s484_s26  }
  0xaa   :  { %478 = dma.done.wait [#allocation4], 256  }
  0xab   :  { %479 = vsyncadd [#allocation4], 4294967040 }
  0xac   :  { %480 = dma.done.wait [#allocation10], 256  }
  0xad   :  { %481 = vsyncadd [#allocation10], 4294967040 }
  0xae   :  { %331 = vsyncpa [#allocation3], 1 }
  0xaf   :  { %332 = vsyncpa [#allocation6], 1 }
  0xb0   :  { %333 = vsyncpa [#allocation4], 1 }
  0xb1   :  { %334 = vsyncpa [#allocation10], 1 }

</bundles_post_ra>
